<compile_context>
chip_gen: v7x
topology: tpu7x:2x2x1
jax: 0.10.0
libtpu: 0.0.40
codegen_flags: <defaults>
</compile_context>

<pallas_src>
import functools

import jax
import jax.numpy as jnp
from jax import lax
from jax.experimental import pallas as pl
from jax.experimental.pallas import tpu as pltpu

_BN_EPS = 1e-5
_MXU_DTYPE = jnp.float32   # MXU operand dtype; accumulation is always f32.


@functools.lru_cache(maxsize=None)
def _vmem_limit():
    """Generation-aware scoped-VMEM limit (128 MiB v5e/v6e parts, 64 MiB v7x)."""
    try:
        cap = int(pltpu.get_tpu_info().vmem_capacity_bytes)
    except Exception:
        cap = 64 * 1024 * 1024
    return int(min(cap * 3 // 4, 100 * 1024 * 1024))


def _compiler_params():
    return pltpu.CompilerParams(
        dimension_semantics=("parallel", "parallel"),   # megacore sharding on v7x
        vmem_limit_bytes=_vmem_limit(),
    )


def _row_tile(h, n_batch, bytes_per_row):
    """Row-tile size: a divisor of h, as large as the VMEM budget allows
    (amortizes the ~600-cycle per-grid-step overhead), preferring multiples of
    8 and keeping >= 2 total grid steps so both v7x TensorCores get work."""
    budget = _vmem_limit() // 8            # double-buffered I/O + in-kernel copies
    cap = max(1, min(h, budget // max(bytes_per_row, 1)))
    divs = [d for d in range(1, h + 1) if h % d == 0 and d <= cap] or [1]

    def rank(d):
        return (n_batch * (h // d) >= 2, d % 8 == 0, d)

    return max(divs, key=rank)


# --------------------- ConvTranspose2d (kernel=2, stride=2) ------------------
def _convt2x2_kernel(x_ref, w_ref, b_ref, o_ref, *, th, w1, cin, cout):
    # x_ref: (th, W, Cin); w_ref: (2, Cin, 2*Cout) ordered (dy)(ci)(dx,co)
    # o_ref: (th, 2, W, 2*Cout) -- row-major identical to (2*th, 2*W, Cout),
    # so the 2x2 de-interleave is done here and the wrapper reshape is free.
    x = x_ref[...].reshape(th * w1, cin).astype(_MXU_DTYPE)
    rows = []
    for dy in range(2):
        r = jnp.dot(x, w_ref[dy].astype(_MXU_DTYPE),
                    preferred_element_type=jnp.float32)          # (th*W, 2*Cout)
        rows.append(r.reshape(th, 1, w1, 2 * cout))
    out = jnp.concatenate(rows, axis=1) + b_ref[...]             # (th, 2, W, 2*Cout)
    o_ref[...] = out.astype(o_ref.dtype)


def convtranspose2x2(x_nhwc, wt, bt):
    """x: (N,H,W,Cin) NHWC; wt: (Cin,Cout,2,2) (PyTorch layout); bt: (Cout,)."""
    N, H, W, Cin = x_nhwc.shape
    Cout = wt.shape[1]
    th = _row_tile(H, N, 4 * W * (Cin + 8 * Cout))
    nth = H // th

    # weight (dy, ci, (dx, co)); bias tiled over dx.
    w_dy = jnp.transpose(wt, (2, 0, 3, 1)).reshape(2, Cin, 2 * Cout)
    b2 = jnp.tile(bt, 2).reshape(1, 2 * Cout)

    raw = pl.pallas_call(
        functools.partial(_convt2x2_kernel, th=th, w1=W, cin=Cin, cout=Cout),
        grid=(N, nth),
        in_specs=[
            pl.BlockSpec((None, th, W, Cin), lambda n, t: (n, t, 0, 0)),
            pl.BlockSpec((2, Cin, 2 * Cout), lambda n, t: (0, 0, 0)),   # VMEM-resident
            pl.BlockSpec((1, 2 * Cout), lambda n, t: (0, 0)),
        ],
        out_specs=pl.BlockSpec((None, th, 2, W, 2 * Cout),
                               lambda n, t: (n, t, 0, 0, 0)),
        out_shape=jax.ShapeDtypeStruct((N, H, 2, W, 2 * Cout), jnp.float32),
        compiler_params=_compiler_params(),
    )(x_nhwc, w_dy, b2)

    # (N,H,2,W,2*Cout) and (N,2H,2W,Cout) share the same row-major layout:
    # this reshape is a free bitcast, NOT an HBM relayout.
    return raw.reshape(N, 2 * H, 2 * W, Cout)


# --------------- Conv3x3(pad=1) pass-1: conv (+ fused input BN/ReLU) ---------
def _conv3x3_pass1_kernel(*args, cins, cout, th, width, in_act):
    # Per source s: main (th, W, Cin_s), top halo (1, W, Cin_s), bot halo (1, W, Cin_s)
    # then per source: weight (9, Cin_s, Cout); then bias (1, Cout);
    # then (optional) input BN scale/shift (1, 1, Cin); outputs y, mu, m2.
    n_src = len(cins)
    pos = 0
    srcs = []
    for _ in range(n_src):
        srcs.append(args[pos:pos + 3]); pos += 3
    w_refs = args[pos:pos + n_src]; pos += n_src
    b_ref = args[pos]; pos += 1
    if in_act:
        sc_ref, sh_ref = args[pos], args[pos + 1]; pos += 2
    y_ref, mu_ref, m2_ref = args[pos:pos + 3]

    t = pl.program_id(1)
    nt = pl.num_programs(1)

    acc = jnp.zeros((th * width, cout), jnp.float32) + b_ref[...]   # conv bias

    for s in range(n_src):
        cin = cins[s]
        main_ref, top_ref, bot_ref = srcs[s]
        main = main_ref[...]
        top = top_ref[...]
        bot = bot_ref[...]
        if in_act:
            # Fused BN-apply + ReLU of the *previous* conv (applied to the band,
            # including halo rows) -> no separate HBM pass for that activation.
            sc = sc_ref[...]
            sh = sh_ref[...]
            main = jnp.maximum(main * sc + sh, 0.0)
            top = jnp.maximum(top * sc + sh, 0.0)
            bot = jnp.maximum(bot * sc + sh, 0.0)
        # H zero-padding folded in-kernel: boundary tiles blank their halo row.
        top = jnp.where(t == 0, jnp.zeros_like(top), top)
        bot = jnp.where(t == nt - 1, jnp.zeros_like(bot), bot)
        rows = jnp.concatenate([top, main, bot], axis=0)            # (th+2, W, Cin)
        # W zero-padding folded in-kernel (8-wide pads keep the concat aligned).
        zpad = jnp.zeros((th + 2, 8, cin), rows.dtype)
        band = jnp.concatenate([zpad, rows, zpad], axis=1)          # (th+2, W+16, Cin)

        w_ref = w_refs[s]
        for dy in range(3):
            for dx in range(3):
                tap = band[dy:dy + th, 7 + dx:7 + dx + width, :]
                tap = tap.reshape(th * width, cin).astype(_MXU_DTYPE)
                acc = acc + jnp.dot(tap, w_ref[dy * 3 + dx].astype(_MXU_DTYPE),
                                    preferred_element_type=jnp.float32)

    y_ref[...] = acc.reshape(th, width, cout).astype(y_ref.dtype)

    # Per-tile BatchNorm statistics (tile mean + sum of squared deviations),
    # combined across tiles in the wrapper (Chan) -> numerically safe variance.
    mu = jnp.mean(acc, axis=0, keepdims=True)                       # (1, Cout)
    d = acc - mu
    mu_ref[...] = mu
    m2_ref[...] = jnp.sum(d * d, axis=0, keepdims=True)


def _conv3x3_bn_stats(srcs, weights, bias, in_scale=None, in_shift=None):
    """3x3 conv (padding=1) over the channel-concatenation of `srcs` (without
    materializing the concat), with optional fused BN+ReLU applied to the
    input.  Returns (pre-BN conv output, batch mean, biased batch variance)."""
    N, H, W, _ = srcs[0].shape
    cins = tuple(int(s.shape[-1]) for s in srcs)
    cout = int(weights[0].shape[-1])
    in_act = in_scale is not None

    th = _row_tile(H, N, 4 * W * (4 * sum(cins) + 3 * cout))
    nth = H // th

    in_specs = []
    inputs = []
    for s in srcs:
        C = int(s.shape[-1])
        in_specs += [
            pl.BlockSpec((None, th, W, C), lambda n, t: (n, t, 0, 0)),
            # 1-row halos with clamped element offsets (block size 1 on the row
            # axis, which is outside the (8,128)-constrained last two dims).
            pl.BlockSpec((None, 1, W, C),
                         lambda n, t: (n, jnp.maximum(t * th - 1, 0), 0, 0)),
            pl.BlockSpec((None, 1, W, C),
                         lambda n, t: (n, jnp.minimum((t + 1) * th, H - 1), 0, 0)),
        ]
        inputs += [s, s, s]
    for w in weights:                                   # VMEM-resident weights
        in_specs.append(pl.BlockSpec(tuple(w.shape), lambda n, t: (0, 0, 0)))
        inputs.append(w)
    in_specs.append(pl.BlockSpec((1, cout), lambda n, t: (0, 0)))
    inputs.append(bias.reshape(1, cout))
    if in_act:
        cin0 = cins[0]
        in_specs += [pl.BlockSpec((1, 1, cin0), lambda n, t: (0, 0, 0))] * 2
        inputs += [in_scale.reshape(1, 1, cin0), in_shift.reshape(1, 1, cin0)]

    y, mu_t, m2_t = pl.pallas_call(
        functools.partial(_conv3x3_pass1_kernel, cins=cins, cout=cout,
                          th=th, width=W, in_act=in_act),
        grid=(N, nth),
        in_specs=in_specs,
        out_specs=[
            pl.BlockSpec((None, th, W, cout), lambda n, t: (n, t, 0, 0)),
            pl.BlockSpec((None, None, 1, cout), lambda n, t: (n, t, 0, 0)),
            pl.BlockSpec((None, None, 1, cout), lambda n, t: (n, t, 0, 0)),
        ],
        out_shape=[
            jax.ShapeDtypeStruct((N, H, W, cout), jnp.float32),
            jax.ShapeDtypeStruct((N, nth, 1, cout), jnp.float32),
            jax.ShapeDtypeStruct((N, nth, 1, cout), jnp.float32),
        ],
        compiler_params=_compiler_params(),
    )(*inputs)

    # Combine per-tile stats (all tiles have th*W rows -> simple Chan combine).
    rows_per_tile = th * W
    total = N * H * W
    mu_t = mu_t.reshape(N * nth, cout)
    m2_t = m2_t.reshape(N * nth, cout)
    mean = jnp.mean(mu_t, axis=0)
    var = (jnp.sum(m2_t, axis=0)
           + rows_per_tile * jnp.sum((mu_t - mean) ** 2, axis=0)) / total
    return y, mean, var


# ----------------------------- final BN + ReLU -------------------------------
def _bn_relu_kernel(x_ref, sc_ref, sh_ref, o_ref):
    o_ref[...] = jnp.maximum(x_ref[...] * sc_ref[...] + sh_ref[...], 0.0)


def bn_relu(x, scale, shift):
    N, H, W, C = x.shape
    th = _row_tile(H, N, 4 * W * 2 * C)
    nth = H // th
    return pl.pallas_call(
        _bn_relu_kernel,
        grid=(N, nth),
        in_specs=[
            pl.BlockSpec((None, th, W, C), lambda n, t: (n, t, 0, 0)),
            pl.BlockSpec((1, 1, C), lambda n, t: (0, 0, 0)),
            pl.BlockSpec((1, 1, C), lambda n, t: (0, 0, 0)),
        ],
        out_specs=pl.BlockSpec((None, th, W, C), lambda n, t: (n, t, 0, 0)),
        out_shape=jax.ShapeDtypeStruct((N, H, W, C), jnp.float32),
        input_output_aliases={0: 0},                 # write in place
        compiler_params=_compiler_params(),
    )(x, scale.reshape(1, 1, C), shift.reshape(1, 1, C))


# --------------------------------- UpBlock -----------------------------------
class UpBlockPallas:
    """Pallas TPU port of the PyTorch UpBlock forward (BatchNorm in training
    mode, i.e. per-batch statistics, as a fresh nn.Module computes)."""

    def __init__(self, key, inchannels, outchannels):
        self.inC = inchannels
        self.outC = outchannels
        ks = jax.random.split(key, 6)

        bt = 1.0 / (inchannels * 2 * 2) ** 0.5
        self.wt = jax.random.uniform(ks[0], (inchannels, outchannels, 2, 2),
                                     jnp.float32, -bt, bt)      # (Cin,Cout,kh,kw)
        self.bt = jax.random.uniform(ks[1], (outchannels,), jnp.float32, -bt, bt)

        b1 = 1.0 / (inchannels * 9) ** 0.5
        self.w1 = jax.random.uniform(ks[2], (3, 3, inchannels, outchannels),
                                     jnp.float32, -b1, b1)      # HWIO
        self.b1 = jax.random.uniform(ks[3], (outchannels,), jnp.float32, -b1, b1)
        self.g1 = jnp.ones((outchannels,), jnp.float32)
        self.be1 = jnp.zeros((outchannels,), jnp.float32)

        b2 = 1.0 / (outchannels * 9) ** 0.5
        self.w2 = jax.random.uniform(ks[4], (3, 3, outchannels, outchannels),
                                     jnp.float32, -b2, b2)
        self.b2 = jax.random.uniform(ks[5], (outchannels,), jnp.float32, -b2, b2)
        self.g2 = jnp.ones((outchannels,), jnp.float32)
        self.be2 = jnp.zeros((outchannels,), jnp.float32)

    def __call__(self, x1_nchw, x2_nchw):
        # NCHW (PyTorch) -> NHWC (channels on the 128-lane axis)
        x1 = jnp.transpose(x1_nchw, (0, 2, 3, 1))
        x2 = jnp.transpose(x2_nchw, (0, 2, 3, 1))
        up = convtranspose2x2(x1, self.wt, self.bt)      # (N, 2H, 2W, outC)

        Cs = int(x2.shape[-1])
        assert Cs + self.outC == self.inC, "skip/up channel mismatch"

        # conv1 consumes x2 and up as separate sources (no HBM concat); the
        # weight is split into the matching input-channel row blocks.
        w1_skip = self.w1[:, :, :Cs, :].reshape(9, Cs, self.outC)
        w1_up = self.w1[:, :, Cs:, :].reshape(9, self.outC, self.outC)
        y1, m1, v1 = _conv3x3_bn_stats([x2, up], [w1_skip, w1_up], self.b1)
        sc1 = self.g1 * lax.rsqrt(v1 + _BN_EPS)
        sh1 = self.be1 - m1 * sc1

        # conv2 with conv1's BN-apply + ReLU fused into its band load.
        w2f = self.w2.reshape(9, self.outC, self.outC)
        y2, m2, v2 = _conv3x3_bn_stats([y1], [w2f], self.b2,
                                       in_scale=sc1, in_shift=sh1)
        sc2 = self.g2 * lax.rsqrt(v2 + _BN_EPS)
        sh2 = self.be2 - m2 * sc2

        y = bn_relu(y2, sc2, sh2)
        return jnp.transpose(y, (0, 3, 1, 2))            # back to NCHW


# ---------------------------- pure-JAX reference -----------------------------
def ref_upblock(x1_nchw, x2_nchw, blk):
    t = jnp.einsum('ncij,cokl->noikjl', x1_nchw, blk.wt,
                   precision=lax.Precision.HIGHEST)
    N, Co, H, _, W, _ = t.shape
    up = t.reshape(N, Co, 2 * H, 2 * W) + blk.bt.reshape(1, -1, 1, 1)
    x = jnp.concatenate([x2_nchw, up], axis=1)
    for (w, b, g, be) in ((blk.w1, blk.b1, blk.g1, blk.be1),
                          (blk.w2, blk.b2, blk.g2, blk.be2)):
        y = lax.conv_general_dilated(
            x, w, window_strides=(1, 1), padding=[(1, 1), (1, 1)],
            dimension_numbers=("NCHW", "HWIO", "NCHW"),
            precision=lax.Precision.HIGHEST)
        y = y + b.reshape(1, -1, 1, 1)
        mean = y.mean(axis=(0, 2, 3), keepdims=True)
        var = ((y - mean) ** 2).mean(axis=(0, 2, 3), keepdims=True)
        y = (y - mean) * lax.rsqrt(var + _BN_EPS) * g.reshape(1, -1, 1, 1) \
            + be.reshape(1, -1, 1, 1)
        x = jnp.maximum(y, 0.0)
    return x


if __name__ == "__main__":
    key = jax.random.PRNGKey(0)
    k1, k2, kp = jax.random.split(key, 3)

    # UpBlock(inchannels=8, outchannels=4):
    #   x1 (decoder feature): (N, 8, 8, 8); x2 (skip connection): (N, 4, 16, 16)
    x1 = jax.random.normal(k1, (2, 8, 8, 8), jnp.float32)
    x2 = jax.random.normal(k2, (2, 4, 16, 16), jnp.float32)

    block = UpBlockPallas(kp, inchannels=8, outchannels=4)

    out = jax.block_until_ready(block(x1, x2))
    assert out.shape == (2, 4, 16, 16), out.shape
    assert bool(jnp.all(jnp.isfinite(out)))

    ref = jax.block_until_ready(ref_upblock(x1, x2, block))
    max_err = float(jnp.max(jnp.abs(out - ref)))
    assert max_err < 5e-2, f"mismatch vs reference: {max_err}"

    print("KERNEL_OK")
</pallas_src>

<mosaic_0001>
module attributes {stable_mosaic.version = 11 : i64} {
  func.func @_convt2x2_kernel(%arg0: i32, %arg1: i32, %arg2: memref<1x8x8x8xf32, #tpu.memory_space<vmem>>, %arg3: memref<2x8x8xf32, #tpu.memory_space<vmem>>, %arg4: memref<1x8xf32, #tpu.memory_space<vmem>>, %arg5: memref<1x8x2x8x8xf32, #tpu.memory_space<vmem>>) attributes {dimension_semantics = [#tpu.dimension_semantics<parallel>, #tpu.dimension_semantics<parallel>], iteration_bounds = array<i64: 2, 1>, scalar_prefetch = 0 : i64, scratch_operands = 0 : i64, tpu.core_type = #tpu.core_type<tc>, window_params = [{transform_indices = @transform_0, window_bounds = array<i64: 1, 8, 8, 8>}, {pipeline_mode = #tpu.pipeline_mode<synchronous>, transform_indices = @transform_1, window_bounds = array<i64: 2, 8, 8>}, {pipeline_mode = #tpu.pipeline_mode<synchronous>, transform_indices = @transform_2, window_bounds = array<i64: 1, 8>}, {transform_indices = @transform_3, window_bounds = array<i64: 1, 8, 2, 8, 8>}]} {
    %c0 = arith.constant 0 : index
    %c0_0 = arith.constant 0 : index
    %c0_1 = arith.constant 0 : index
    %c0_2 = arith.constant 0 : index
    %0 = vector.load %arg2[%c0, %c0_0, %c0_1, %c0_2] : memref<1x8x8x8xf32, #tpu.memory_space<vmem>>, vector<1x8x8x8xf32>
    %1 = vector.shape_cast %0 : vector<1x8x8x8xf32> to vector<8x8x8xf32>
    %2 = vector.shape_cast %1 : vector<8x8x8xf32> to vector<64x8xf32>
    %c0_3 = arith.constant 0 : index
    %c0_4 = arith.constant 0 : index
    %c0_5 = arith.constant 0 : index
    %3 = vector.load %arg3[%c0_3, %c0_4, %c0_5] : memref<2x8x8xf32, #tpu.memory_space<vmem>>, vector<1x8x8xf32>
    %4 = vector.shape_cast %3 : vector<1x8x8xf32> to vector<8x8xf32>
    %cst = arith.constant dense<0.000000e+00> : vector<64x8xf32>
    %5 = tpu.matmul %2, %4, %cst {dimension_numbers = #tpu.dot_dimension_numbers<[1], [0], [0], [1], [0, 0, 1, 1], [], []>} : vector<64x8xf32>, vector<8x8xf32>, vector<64x8xf32> -> vector<64x8xf32>
    %6 = vector.shape_cast %5 : vector<64x8xf32> to vector<8x1x8x8xf32>
    %c1 = arith.constant 1 : index
    %c0_6 = arith.constant 0 : index
    %c0_7 = arith.constant 0 : index
    %7 = vector.load %arg3[%c1, %c0_6, %c0_7] : memref<2x8x8xf32, #tpu.memory_space<vmem>>, vector<1x8x8xf32>
    %8 = vector.shape_cast %7 : vector<1x8x8xf32> to vector<8x8xf32>
    %cst_8 = arith.constant dense<0.000000e+00> : vector<64x8xf32>
    %9 = tpu.matmul %2, %8, %cst_8 {dimension_numbers = #tpu.dot_dimension_numbers<[1], [0], [0], [1], [0, 0, 1, 1], [], []>} : vector<64x8xf32>, vector<8x8xf32>, vector<64x8xf32> -> vector<64x8xf32>
    %10 = vector.shape_cast %9 : vector<64x8xf32> to vector<8x1x8x8xf32>
    %11 = tpu.concatenate %6, %10 in 1 : vector<8x1x8x8xf32>, vector<8x1x8x8xf32> -> vector<8x2x8x8xf32>
    %c0_9 = arith.constant 0 : index
    %c0_10 = arith.constant 0 : index
    %12 = vector.load %arg4[%c0_9, %c0_10] : memref<1x8xf32, #tpu.memory_space<vmem>>, vector<1x8xf32>
    %13 = vector.shape_cast %12 : vector<1x8xf32> to vector<1x1x1x8xf32>
    %14 = vector.broadcast %13 : vector<1x1x1x8xf32> to vector<8x2x8x8xf32>
    %15 = arith.addf %11, %14 : vector<8x2x8x8xf32>
    %c0_11 = arith.constant 0 : index
    %c0_12 = arith.constant 0 : index
    %c0_13 = arith.constant 0 : index
    %c0_14 = arith.constant 0 : index
    %c0_15 = arith.constant 0 : index
    %16 = vector.load %arg5[%c0_11, %c0_12, %c0_13, %c0_14, %c0_15] : memref<1x8x2x8x8xf32, #tpu.memory_space<vmem>>, vector<1x8x2x8x8xf32>
    %17 = vector.shape_cast %16 : vector<1x8x2x8x8xf32> to vector<8x2x8x8xf32>
    %18 = vector.shape_cast %15 : vector<8x2x8x8xf32> to vector<1x8x2x8x8xf32>
    tpu.vector_store %arg5[%c0_11, %c0_12, %c0_13, %c0_14, %c0_15], %18 {strides = array<i32>} : memref<1x8x2x8x8xf32, #tpu.memory_space<vmem>>, vector<1x8x2x8x8xf32>,
    return
  }
  func.func @transform_0(%arg0: i32, %arg1: i32) -> (i32, i32, i32, i32) {
    %c0_i32 = arith.constant 0 : i32
    %c0_i32_0 = arith.constant 0 : i32
    %c0_i32_1 = arith.constant 0 : i32
    return %arg0, %arg1, %c0_i32, %c0_i32_0 : i32, i32, i32, i32
  }
  func.func @transform_1(%arg0: i32, %arg1: i32) -> (i32, i32, i32) {
    %c0_i32 = arith.constant 0 : i32
    %c0_i32_0 = arith.constant 0 : i32
    %c0_i32_1 = arith.constant 0 : i32
    %c0_i32_2 = arith.constant 0 : i32
    return %c0_i32, %c0_i32_0, %c0_i32_1 : i32, i32, i32
  }
  func.func @transform_2(%arg0: i32, %arg1: i32) -> (i32, i32) {
    %c0_i32 = arith.constant 0 : i32
    %c0_i32_0 = arith.constant 0 : i32
    %c0_i32_1 = arith.constant 0 : i32
    return %c0_i32, %c0_i32_0 : i32, i32
  }
  func.func @transform_3(%arg0: i32, %arg1: i32) -> (i32, i32, i32, i32, i32) {
    %c0_i32 = arith.constant 0 : i32
    %c0_i32_0 = arith.constant 0 : i32
    %c0_i32_1 = arith.constant 0 : i32
    %c0_i32_2 = arith.constant 0 : i32
    return %arg0, %arg1, %c0_i32, %c0_i32_0, %c0_i32_1 : i32, i32, i32, i32, i32
  }
}

</mosaic_0001>

<bundles_post_ra>
// kernel: tpu_custom_call.1
= control target key start
LH: loop header
LB: loop body
LE: loop exit
PB: predicated region body
PF: predicated region fallthrough
CT: control target
= control target key end

     0   :  { %8 = vsyncpa [#allocation3], 0  ;;  %s1245_s0 = inlined_call_operand.hbm [shape: f32[2,8,8,8], index: 0, kind: input, shape index: {}]   ;;  %s1246_s1 = inlined_call_operand.hbm [shape: f32[2,8,8], index: 1, kind: input, shape index: {}]   ;;  %s1247_s2 = inlined_call_operand.vmem [shape: f32[1,8], index: 2, kind: input, shape index: {}]   ;;  %s1248_s3 = inlined_call_operand.hbm [shape: f32[2,8,2,8,8], index: 3, kind: output, shape index: {}]  }
   0x1   :  { %10 = vsyncpa [#allocation3 + $0x1], 0 }
   0x2   :  { %11 = vsyncpa [#allocation6], 0 }
   0x3   :  { %12 = vsyncpa [#allocation4], 0 }
   0x4   :  { %14 = vsyncpa [#allocation4 + $0x1], 0  ;;  %s955_s12 = smov 0   ;;  %s957_s13 = smov 0  }
   0x5   :  { %s959_s14 = smov 0   ;;  %s961_s15 = smov 0  }
   0x6   :  { %s963_s16 = smov 0   ;;  %s965_s17 = smov 0  }
   0x7 LB: > { %s623_s18 = sadd.s32 4294967295, %s926_s17   ;;  %s624_s19 = sadd.s32 4294967294, %s926_s17   ;;  %s926_s17 = sphi %s965_s17, %s20_s17   ;;  %s922_s16 = sphi %s963_s16, %s1272_s16   ;;  %s918_s15 = sphi %s961_s15, %s1271_s15   ;;  %s914_s14 = sphi %s959_s14, %s1270_s14   ;;  %s910_s13 = sphi %s957_s13, %s1269_s13   ;;  %s906_s12 = sphi %s955_s12, %s1268_s12  }
   0x8   : > { %p54_p0 = scmp.ne.s32.totalorder %s910_s13, %s906_s12  ;;  %p989_p1 = scmp.eq.s32.totalorder %s623_s18, 0 }
   0x9   : > { %p993_p2 = scmp.eq.s32.totalorder %s623_s18, 1  ;;  %p128_p3 = scmp.eq.s32.totalorder %s624_s19, 1 }
   0xa   : > { %s1253_s20 = scalar_select %p989_p1, 1, 0 }
   0xb   : > { %s1254_s21 = scalar_select %p993_p2, 1, 0 }
   0xc   : > { %p999_p4 = por %p989_p1, %p54_p0  ;;  %p625_p5 = scmp.ge.s32.totalorder %s926_s17, 1 }
   0xd   : > { %p1004_p6 = por %p128_p3, %p54_p0  ;;  %p135_p7 = scmp.lt.s32.totalorder %s926_s17, 3 }
   0xe   : > { %s1255_s22 = scalar_select %p999_p4, 1, 0 }
   0xf   : > { %s1256_s23 = scalar_select %p1004_p6, 1, 0 }
  0x10   : > { %p1009_p8 = pnand %p625_p5, %p135_p7  ;;  %s928_s25 = smov [#allocation5]  }
  0x11   : > { %s147_s26 = sshll.u32 %s928_s25, 4  ;;  %s32_s28 = sadd.s32 1, %s922_s16  ;;  %s148_s26 = int_to_ptr.vmem [resolvable:$true] %s147_s26 }
  0x12   : > { %s1257_s24 = scalar_select %p1009_p8, 1, 0 }
  0x13   : > { %p713_p9 = pneg %p1009_p8  ;;  %s782_s4 = scalar_lea.hbm %s1246_s1, 256 }
  0x14   : > { %p783_p12 = scmp.ne.s32.totalorder %s1246_s1, %s782_s4  ;;  %p789_p5 = scmp.lt.u32.totalorder %s782_s4, %s1246_s1 }
  0x15   : > { %p1018_p11 = pnand %p713_p9, %p989_p1 }
  0x17   : > { %p784_p13 = pneg %p1018_p11 }
  0x19   : > { %p785_p0 = pnand %p784_p13, %p783_p12 }
  0x1b   : > { %p786_p3 = pneg %p785_p0 }
  0x1d   : > { %p791_p7 = pnand %p789_p5, %p786_p3 }
  0x1f   : > { %794 = shalt.err (!%p791_p7)
}
  0x20   : > { %s795_s9 = scalar_lea.vmem %s148_s26, 256  ;;  %p803_p1 = scmp.lt.s32.totalorder %s148_s26, %s148_s26 }
  0x21   : > { %p796_p9 = scmp.ne.s32.totalorder %s148_s26, %s795_s9  ;;  %p804_p4 = scmp.lt.s32.totalorder %s795_s9, %s795_s9 }
  0x23   : > { %p798_p10 = pnand %p796_p9, %p784_p13  ;;  %p805_p8 = por %p804_p4, %p803_p1 }
  0x25   : > { %p799_p6 = pneg %p798_p10 }
  0x27   : > { %p806_p2 = pnand %p805_p8, %p799_p6 }
  0x29   : > { %809 = shalt.err (!%p806_p2)
}
  0x2a   : > { %s929_s10 = smov 128   ;;  %s930_s11 = smov 8  }
  0x2b   : > { %716 = dma.hbm_to_vmem [thread:$0]  (!%p1018_p11), %s1246_s1, 256, %s148_s26, [#allocation6], %s929_s10, %s929_s10, %s930_s11  }
  0x2c   : > { %p34_p1 = scmp.ge.s32.totalorder %s32_s28, 2  ;;  %s41_s25 = sadd.s32 1, %s914_s14 }
  0x2d   : > { %p48_p2 = scmp.ne.s32.totalorder %s914_s14, %s910_s13  ;;  %p49_p4 = scmp.eq.s32.totalorder %s926_s17, 0 }
  0x2e   : > { %s1274_s28 = smov (%p34_p1, %s32_s28), 0  ;;  %p1260_p8 = scmp.ne.s32.totalorder %s1254_s21, 0 }
  0x2f   : > { %p1048_p6 = por %p49_p4, %p48_p2  ;;  %s36_s30 = ssub.s32 %s922_s16, %s1274_s28 }
  0x30   : > { %p1054_p10 = por %p1260_p8, %p48_p2  ;;  %p726_p12 = scmp.lt.s32.totalorder %s926_s17, 2 }
  0x31   : > { %p39_p11 = scmp.eq.s32.totalorder %s36_s30, 0  ;;  %s164_s26 = sand.u32 1, %s914_s14  }
  0x32   : > { %s628_s4 = sshll.u32 %s164_s26, 6  ;;  %s657_s6 = sshll.u32 %s922_s16, 10 }
  0x33   : > { %s1063_s5 = scalar_select %p39_p11, %s914_s14, %s41_s25  }
  0x34   : > { %s1069_s9 = scalar_lea.hbm %s1245_s0, %s657_s6  ;;  %s168_s21 = scalar_lea.vmem [#allocation2], %s628_s4 }
  0x35   : > { %s177_s18 = sshll.u32 %s168_s21, 4  ;;  %p1075_p13 = pnand %p726_p12, %p1048_p6  ;;  %s1071_s18 = int_to_ptr.vmem [resolvable:$true] %s177_s18 }
  0x36   : > { %s1079_s25 = scalar_lea.sflag [#allocation3], %s164_s26  ;;  %s810_s30 = scalar_lea.hbm %s1069_s9, 1024 }
  0x37   : > { %p811_p0 = scmp.ne.s32.totalorder %s1069_s9, %s810_s30  ;;  %p812_p3 = pneg %p1075_p13 }
  0x38   : > { %s815_s29 = scalar_lea.hbm %s1245_s0, 2048  ;;  %p816_p9 = scmp.lt.u32.totalorder %s1069_s9, %s1245_s0 }
  0x39   : > { %p813_p5 = pnand %p812_p3, %p811_p0  ;;  %p817_p1 = scmp.lt.u32.totalorder %s815_s29, %s810_s30 }
  0x3a   : > { %p819_p4 = scmp.lt.u32.totalorder %s810_s30, %s1069_s9 }
  0x3b   : > { %p814_p7 = pneg %p813_p5  ;;  %p818_p2 = por %p817_p1, %p816_p9 }
  0x3d   : > { %p820_p6 = por %p819_p4, %p818_p2 }
  0x3f   : > { %p821_p8 = pnand %p820_p6, %p814_p7 }
  0x41   : > { %824 = shalt.err (!%p821_p8)
}
  0x42   : > { %s825_s26 = scalar_lea.vmem %s1071_s18, 1024  ;;  %s931_s21 = smov [#allocation2]  }
  0x43   : > { %p826_p12 = scmp.ne.s32.totalorder %s1071_s18, %s825_s26  ;;  %s830_s4 = sshll.u32 %s931_s21, 4  ;;  %s831_s4 = int_to_ptr.vmem [resolvable:$false] %s830_s4 }
  0x44   : > { %s832_s6 = scalar_lea.vmem %s831_s4, 2048  ;;  %p833_p5 = scmp.lt.s32.totalorder %s1071_s18, %s831_s4 }
  0x45   : > { %p828_p11 = pnand %p826_p12, %p812_p3  ;;  %p834_p9 = scmp.lt.s32.totalorder %s832_s6, %s825_s26 }
  0x47   : > { %p829_p0 = pneg %p828_p11  ;;  %p835_p1 = por %p834_p9, %p833_p5 }
  0x49   : > { %p836_p2 = pnand %p835_p1, %p829_p0 }
  0x4b   : > { %839 = shalt.err (!%p836_p2)
}
  0x4c   : > { %720 = dma.hbm_to_vmem [thread:$0]  (!%p1075_p13), %s1069_s9, 1024, %s1071_s18, %s1079_s25, %s929_s10, %s929_s10, %s930_s11  }
  0x4d   : > { %p1263_p3 = scmp.ne.s32.totalorder %s1257_s24, 0 }
  0x4e   : > { %s1113_s30 = sand.u32 (!%p1263_p3), 1, %s910_s13   ;;  %p1264_p7 = scmp.ne.s32.totalorder (!%p1263_p3), %s1255_s22, 0 }
  0x4f   : > { %189 = sbr.rel (%p1263_p3) target bundleno = 336 (0x150), region = 32  ;;  %s632_s29 = sshll.u32 (!%p1263_p3), %s1113_s30, 6 }
  0x50   : > { %s192_s7 = scalar_lea.sflag (!%p1263_p3), [#allocation3], %s1113_s30  ;;  %s1117_s8 = scalar_lea.vmem (!%p1263_p3), [#allocation2], %s632_s29 }
  0x56   : > { %893 = dma.done.wait (%p1264_p7), %s192_s7, 1024  }
  0x57   : > { %895 = vsyncadd (%p1264_p7), %s192_s7, 4294966272  ;;  %p1265_p13 = scmp.ne.s32.totalorder %s1253_s20, 0 }
  0x59   : > { %897 = dma.done.wait (%p1265_p13), [#allocation6], 256  }
  0x5a   : > { %899 = vsyncadd (%p1265_p13), [#allocation6], 4294967040  ;;  %vm233_vm0 = vcmask 64512   ;;  %v232_v0 = vld [vmem:[#allocation5] sm:$0xff]  ;;  %v364_v1 = vld [vmem:[#allocation5 + $0x8] sm:$0xff]  ;;  %s634_s20 = sshll.u32 %s1113_s30, 7 }
  0x5b   : > { %v224_v2 = vld [vmem:[%s1117_s8] sm:$0xff]  ;;  %677 = vmatprep.subr.mxu0 %v232_v0  ;;  %691 = vmatprep.subr.mxu1 %v364_v1  ;;  %v225_v3 = vld [vmem:[%s1117_s8 + $0x8] sm:$0xff]  ;;  %v226_v4 = vld [vmem:[%s1117_s8 + $0x10] sm:$0xff]  ;;  %s1155_s10 = scalar_lea.vmem [#allocation7], %s634_s20  ;;  %s658_s11 = sshll.u32 %s918_s15, 11 }
  0x5c   : > { %678 = vmatpush3.msra.mxu0 %v232_v0  ;;  %679 = vmatprep.mubr.msk.f32.mxu0 %vm233_vm0, %v224_v2  ;;  %v227_v5 = vld [vmem:[%s1117_s8 + $0x18] sm:$0xff]  ;;  %v228_v6 = vld [vmem:[%s1117_s8 + $0x20] sm:$0xff]  ;;  %v229_v7 = vld [vmem:[%s1117_s8 + $0x28] sm:$0xff]  ;;  %s526_s9 = sshll.u32 %s1155_s10, 4  ;;  %s1186_s19 = scalar_lea.hbm %s1248_s3, %s658_s11  ;;  %s1188_s9 = int_to_ptr.vmem [resolvable:$true] %s526_s9 }
  0x5d   : > { %692 = vmatpush3.msra.mxu1 %v364_v1  ;;  %693 = vmatprep.mubr.msk.f32.mxu1 %vm233_vm0, %v224_v2  ;;  %v230_v8 = vld [vmem:[%s1117_s8 + $0x30] sm:$0xff]  ;;  %v231_v9 = vld [vmem:[%s1117_s8 + $0x38] sm:$0xff]  ;;  %v651_v10 = vld [vmem:[%s1247_s2] ss:$0 sm:$0xff]  ;;  %s510_s25 = scalar_lea.sflag [#allocation4], %s1113_s30  ;;  %s840_s26 = scalar_lea.vmem %s1188_s9, 2048 }
  0x5e   : > { %680 = vmatmul.mubr.msk.f32.vlgmr.msra.gmra.mrb[0].mxu0 %vm233_vm0, %v225_v3  ;;  %694 = vmatmul.mubr.msk.f32.vlgmr.msra.gmra.mrb[0].mxu1 %vm233_vm0, %v225_v3  ;;  %p841_p4 = scmp.ne.s32.totalorder %s1188_s9, %s840_s26  ;;  %s932_s21 = smov [#allocation7]  }
  0x5f   : > { %682 = vmatprep.mubr.msk.f32.mxu0 %vm233_vm0, %v226_v4  ;;  %696 = vmatprep.mubr.msk.f32.mxu1 %vm233_vm0, %v226_v4  ;;  %s844_s4 = sshll.u32 %s932_s21, 4  ;;  %s845_s4 = int_to_ptr.vmem [resolvable:$false] %s844_s4 }
  0x60   : > { %p842_p6 = pnand %p841_p4, %p1054_p10  ;;  %s846_s6 = scalar_lea.vmem %s845_s4, 4096 }
  0x61   : > { %p847_p12 = scmp.lt.s32.totalorder %s1188_s9, %s845_s4  ;;  %p848_p11 = scmp.lt.s32.totalorder %s846_s6, %s840_s26 }
  0x62   : > { %683 = vmatmul.mubr.msk.f32.gmra.mrb[2].mxu0 %vm233_vm0, %v227_v5  ;;  %697 = vmatmul.mubr.msk.f32.gmra.mrb[2].mxu1 %vm233_vm0, %v227_v5  ;;  %p843_p8 = pneg %p842_p6 }
  0x63   : > { %685 = vmatprep.mubr.msk.f32.mxu0 %vm233_vm0, %v228_v6  ;;  %699 = vmatprep.mubr.msk.f32.mxu1 %vm233_vm0, %v228_v6  ;;  %p849_p0 = por %p848_p11, %p847_p12 }
  0x65   : > { %p850_p5 = pnand %p849_p0, %p843_p8 }
  0x66   : > { %686 = vmatmul.mubr.msk.f32.gmra.mrb[4].mxu0 %vm233_vm0, %v229_v7  ;;  %700 = vmatmul.mubr.msk.f32.gmra.mrb[4].mxu1 %vm233_vm0, %v229_v7 }
  0x67   : > { %688 = vmatprep.mubr.msk.f32.mxu0 %vm233_vm0, %v230_v8  ;;  %702 = vmatprep.mubr.msk.f32.mxu1 %vm233_vm0, %v230_v8 }
  0x6a   : > { %689 = vmatmul.mubr.msk.f32.gmra.mrb[6].mxu0 %vm233_vm0, %v231_v9  ;;  %703 = vmatmul.mubr.msk.f32.gmra.mrb[6].mxu1 %vm233_vm0, %v231_v9 }
 0x131   : > { %v681_v11 = vpop.f32.mrb[0].mxu0  ;;  %v695_v12 = vpop.f32.mrb[0].mxu1 }
 0x132   : > { %v479_v13 = vadd.f32 %v681_v11, %v651_v10  ;;  %v480_v14 = vadd.f32 %v695_v12, %v651_v10  ;;  %v324_v15 = vpop.f32.mrb[1].mxu0  ;;  %v431_v16 = vpop.f32.mrb[1].mxu1 }
 0x133   : > { %v477_v17 = vadd.f32 %v651_v10, %v324_v15  ;;  %v478_v18 = vadd.f32 %v651_v10, %v431_v16 }
 0x134   : > { %495 = vst.msk [vmem:[%s1155_s10 + $0x10] sm:$0xff] %vm233_vm0, %v479_v13  ;;  %496 = vst.msk [vmem:[%s1155_s10 + $0x18] sm:$0xff] %vm233_vm0, %v480_v14 }
 0x135   : > { %493 = vst.msk [vmem:[%s1155_s10] sm:$0xff] %vm233_vm0, %v477_v17  ;;  %494 = vst.msk [vmem:[%s1155_s10 + $0x8] sm:$0xff] %vm233_vm0, %v478_v18  ;;  %v684_v19 = vpop.f32.mrb[2].mxu0  ;;  %v698_v20 = vpop.f32.mrb[2].mxu1 }
 0x136   : > { %v483_v21 = vadd.f32 %v684_v19, %v651_v10  ;;  %v484_v22 = vadd.f32 %v698_v20, %v651_v10  ;;  %v334_v23 = vpop.f32.mrb[3].mxu0  ;;  %v441_v24 = vpop.f32.mrb[3].mxu1 }
 0x137   : > { %v481_v25 = vadd.f32 %v651_v10, %v334_v23  ;;  %v482_v26 = vadd.f32 %v651_v10, %v441_v24 }
 0x138   : > { %499 = vst.msk [vmem:[%s1155_s10 + $0x30] sm:$0xff] %vm233_vm0, %v483_v21  ;;  %500 = vst.msk [vmem:[%s1155_s10 + $0x38] sm:$0xff] %vm233_vm0, %v484_v22 }
 0x139   : > { %497 = vst.msk [vmem:[%s1155_s10 + $0x20] sm:$0xff] %vm233_vm0, %v481_v25  ;;  %498 = vst.msk [vmem:[%s1155_s10 + $0x28] sm:$0xff] %vm233_vm0, %v482_v26  ;;  %v687_v27 = vpop.f32.mrb[4].mxu0  ;;  %v701_v28 = vpop.f32.mrb[4].mxu1 }
 0x13a   : > { %v487_v29 = vadd.f32 %v687_v27, %v651_v10  ;;  %v488_v30 = vadd.f32 %v701_v28, %v651_v10  ;;  %v344_v31 = vpop.f32.mrb[5].mxu0  ;;  %v451_v32 = vpop.f32.mrb[5].mxu1 }
 0x13b   : > { %v485_v33 = vadd.f32 %v651_v10, %v344_v31  ;;  %v486_v34 = vadd.f32 %v651_v10, %v451_v32 }
 0x13c   : > { %503 = vst.msk [vmem:[%s1155_s10 + $0x50] sm:$0xff] %vm233_vm0, %v487_v29  ;;  %504 = vst.msk [vmem:[%s1155_s10 + $0x58] sm:$0xff] %vm233_vm0, %v488_v30 }
 0x13d   : > { %501 = vst.msk [vmem:[%s1155_s10 + $0x40] sm:$0xff] %vm233_vm0, %v485_v33  ;;  %502 = vst.msk [vmem:[%s1155_s10 + $0x48] sm:$0xff] %vm233_vm0, %v486_v34  ;;  %v690_v35 = vpop.f32.mrb[6].mxu0  ;;  %v704_v36 = vpop.f32.mrb[6].mxu1 }
 0x13e   : > { %v491_v37 = vadd.f32 %v690_v35, %v651_v10  ;;  %v492_v38 = vadd.f32 %v704_v36, %v651_v10  ;;  %v354_v39 = vpop.f32.mrb[7].mxu0  ;;  %v461_v40 = vpop.f32.mrb[7].mxu1 }
 0x13f   : > { %v489_v41 = vadd.f32 %v651_v10, %v354_v39  ;;  %v490_v42 = vadd.f32 %v651_v10, %v461_v40 }
 0x140   : > { %507 = vst.msk [vmem:[%s1155_s10 + $0x70] sm:$0xff] %vm233_vm0, %v491_v37  ;;  %508 = vst.msk [vmem:[%s1155_s10 + $0x78] sm:$0xff] %vm233_vm0, %v492_v38 }
 0x141   : > { %505 = vst.msk [vmem:[%s1155_s10 + $0x60] sm:$0xff] %vm233_vm0, %v489_v41  ;;  %506 = vst.msk [vmem:[%s1155_s10 + $0x68] sm:$0xff] %vm233_vm0, %v490_v42 }
 0x142   : > { %853 = shalt.err (!%p850_p5)
}
 0x143   : > { %s854_s29 = scalar_lea.hbm %s1186_s19, 2048  ;;  %s858_s20 = scalar_lea.hbm %s1248_s3, 4096 }
 0x144   : > { %p855_p9 = scmp.ne.s32.totalorder %s1186_s19, %s854_s29  ;;  %p859_p3 = scmp.lt.u32.totalorder %s1186_s19, %s1248_s3 }
 0x145   : > { %p860_p7 = scmp.lt.u32.totalorder %s858_s20, %s854_s29  ;;  %p862_p4 = scmp.lt.u32.totalorder %s854_s29, %s1186_s19 }
 0x146   : > { %p856_p1 = pnand %p855_p9, %p1054_p10 }
 0x147   : > { %p861_p13 = por %p860_p7, %p859_p3 }
 0x148   : > { %p857_p2 = pneg %p856_p1 }
 0x149   : > { %p863_p6 = por %p862_p4, %p861_p13 }
 0x14b   : > { %p864_p8 = pnand %p863_p6, %p857_p2 }
 0x14d   : > { %867 = shalt.err (!%p864_p8)
}
 0x14e   : > { %s933_s10 = smov 128   ;;  %s934_s11 = smov 8  }
 0x14f   : > { %711 = dma.vmem_to_hbm [thread:$0]  (%p1054_p10), %s1188_s9, 2048, %s1186_s19, %s510_s25, %s933_s10, %s933_s10, %s934_s11  }
 0x150 PF: > { %s541_s15 = sand.u32 1, %s906_s12   ;;  %p1266_p12 = scmp.ne.s32.totalorder %s1256_s23, 0 }
 0x151   : > { %p1267_p11 = scmp.ge.s32.totalorder %s926_s17, 2  ;;  %s542_s18 = scalar_lea.sflag [#allocation4], %s541_s15 }
 0x153   : > { %p722_p0 = pnand %p1267_p11, %p1266_p12 }
 0x155   : > { %901 = dma.done.wait (!%p722_p0), %s542_s18, 2048  }
 0x156   : > { %903 = vsyncadd (!%p722_p0), %s542_s18, 4294965248  ;;  %s20_s17 = sadd.s32 1, %s926_s17   ;;  %s1268_s12 = smov %s910_s13 }
 0x157   : > { %p17_p5 = scmp.ge.s32.totalorder %s20_s17, 4   ;;  %s1269_s13 = smov %s914_s14 }
 0x158   : > { %s1270_s14 = smov %s1063_s5  ;;  %s1271_s15 = smov %s922_s16 }
 0x159   : > { %s1272_s16 = smov %s1274_s28  ;;  %19 = sbr.rel (!%p17_p5) target bundleno = 7 (0x7), region = 82 }
 0x160   :  { %547 = vsyncpa [#allocation3], 1 }
 0x161   :  { %549 = vsyncpa [#allocation3 + $0x1], 1 }
 0x162   :  { %550 = vsyncpa [#allocation6], 1 }
 0x163   :  { %551 = vsyncpa [#allocation4], 1 }
 0x164   :  { %553 = vsyncpa [#allocation4 + $0x1], 1 }

</bundles_post_ra>
